<compile_context>
chip_gen: v5e
topology: v5e:2x2
jax: 0.10.0
libtpu: 0.0.40
codegen_flags: <defaults>
</compile_context>

<pallas_src>
import functools
import math

import jax
import jax.numpy as jnp
from jax import lax
from jax.experimental import pallas as pl
from jax.experimental.pallas import tpu as pltpu


def _mhsa_kernel(scale, num_heads, d_model, h_ref, w_ref, b_ref, o_ref):
    x = h_ref[0]          # (N, d)
    w = w_ref[...]        # (d, 3*H*d) packed [Q heads | K heads | V heads]
    b = b_ref[...]        # (1, 3*H*d)

    # Single wide, lane-dense QKV projection for all heads (one MXU matmul),
    # with one fused bias broadcast-add.
    qkv = jnp.dot(x, w, preferred_element_type=jnp.float32) + b   # (N, 3*H*d)

    hd = num_heads * d_model
    q_all = qkv[:, :hd] * scale          # fold 1/sqrt(d) into q (one VPU mul)
    k_all = qkv[:, hd:2 * hd]
    v_all = qkv[:, 2 * hd:]

    outs = []
    for h in range(num_heads):           # static, unrolled: num_heads is small
        lo, hi = h * d_model, (h + 1) * d_model
        q = q_all[:, lo:hi].astype(jnp.bfloat16)
        k = k_all[:, lo:hi].astype(jnp.bfloat16)
        v = v_all[:, lo:hi].astype(jnp.bfloat16)

        # Scores: contract last dims of q and k directly (no explicit k.T).
        s = lax.dot_general(q, k, (((1,), (1,)), ((), ())),
                            preferred_element_type=jnp.float32)   # (N, N)

        # Numerically stable softmax; elementwise math stays in f32
        # (v5e VPU/EUP have no bf16), denominator reciprocal goes to the EUP.
        m = jnp.max(s, axis=-1, keepdims=True)
        p = jnp.exp(s - m)
        l = jnp.sum(p, axis=-1, keepdims=True)
        pw = p * pl.reciprocal(l, approx=True)

        # bf16 MXU inputs, f32 accumulation (flash-attention pattern).
        outs.append(jnp.dot(pw.astype(jnp.bfloat16), v,
                            preferred_element_type=jnp.float32))  # (N, d)

    # One lane-dense (N, H*d) store, already in torch.cat(head outputs) order.
    o_ref[0] = jnp.concatenate(outs, axis=-1).astype(o_ref.dtype)


def multi_head_self_attention(H, Wq, Wk, Wv, bq, bk, bv):
    """H: (bs, N, d_model); W*: (num_heads, d_model, d_model) in x @ W form;
    b*: (num_heads, d_model). Returns (bs, N, num_heads * d_model)."""
    bs, N, d_model = H.shape
    num_heads = Wq.shape[0]
    hd = num_heads * d_model
    scale = 1.0 / math.sqrt(float(d_model))

    # Pack all heads' weights into one lane-dense (d, 3*H*d) matrix:
    # columns [h*d:(h+1)*d] of each block are head h's weight.
    def _pack(W):                        # (H, d, d) -> (d, H*d)
        return W.transpose(1, 0, 2).reshape(d_model, hd)

    W_packed = jnp.concatenate([_pack(Wq), _pack(Wk), _pack(Wv)], axis=1)
    b_packed = jnp.concatenate(
        [bq.reshape(-1), bk.reshape(-1), bv.reshape(-1)]).reshape(1, 3 * hd)

    grid = (bs,)
    h_spec = pl.BlockSpec((1, N, d_model), lambda b: (b, 0, 0))
    w_spec = pl.BlockSpec((d_model, 3 * hd), lambda b: (0, 0))   # resident
    b_spec = pl.BlockSpec((1, 3 * hd), lambda b: (0, 0))         # resident
    o_spec = pl.BlockSpec((1, N, hd), lambda b: (b, 0, 0))       # lane-dense

    # Explicit, conservative VMEM budget: double-buffered H/out tiles plus the
    # resident packed weights/bias, with headroom. Clamped so it is safe on
    # v5e (16 MiB default scoped) through v7x (64 MiB physical).
    itemsize = 4
    tile_bytes = 2 * (N * d_model + N * hd) * itemsize           # in + out, x2 bufs
    w_bytes = 2 * (d_model * 3 * hd + 3 * hd) * itemsize
    vmem_limit = int(min(48 * 1024 * 1024,
                         max(8 * 1024 * 1024, 4 * (tile_bytes + w_bytes))))

    kernel = functools.partial(_mhsa_kernel, scale, num_heads, d_model)
    out = pl.pallas_call(
        kernel,
        out_shape=jax.ShapeDtypeStruct((bs, N, hd), H.dtype),
        grid_spec=pltpu.PrefetchScalarGridSpec(
            num_scalar_prefetch=0,
            grid=grid,
            in_specs=[h_spec, w_spec, b_spec],
            out_specs=o_spec,
        ),
        compiler_params=pltpu.CompilerParams(
            dimension_semantics=("parallel",),
            vmem_limit_bytes=vmem_limit),
    )(H, W_packed, b_packed)
    return out


def _reference(H, Wq, Wk, Wv, bq, bk, bv):
    """Pure-JAX reference mirroring the PyTorch module semantics."""
    bs, N, d_model = H.shape
    outs = []
    for h in range(Wq.shape[0]):
        Q = H @ Wq[h] + bq[h]
        K = H @ Wk[h] + bk[h]
        V = H @ Wv[h] + bv[h]
        S = jnp.einsum("bnd,bmd->bnm", Q, K) / jnp.sqrt(
            jnp.array(d_model, jnp.float32))
        A = jax.nn.softmax(S, axis=-1)
        outs.append(jnp.einsum("bnm,bmd->bnd", A, V))
    return jnp.concatenate(outs, axis=-1)


if __name__ == "__main__":
    bs, N, d_model, num_heads = 2, 8, 32, 4

    key = jax.random.PRNGKey(0)
    kH, kq, kk, kv, kbq, kbk, kbv = jax.random.split(key, 7)

    H = jax.random.normal(kH, (bs, N, d_model), dtype=jnp.float32)

    # Deterministic synthetic parameters (nn.Linear(d_model, d_model) per head,
    # stored pre-transposed so the math is x @ W + b).
    bound = 1.0 / math.sqrt(d_model)
    Wq = jax.random.uniform(kq, (num_heads, d_model, d_model),
                            minval=-bound, maxval=bound, dtype=jnp.float32)
    Wk = jax.random.uniform(kk, (num_heads, d_model, d_model),
                            minval=-bound, maxval=bound, dtype=jnp.float32)
    Wv = jax.random.uniform(kv, (num_heads, d_model, d_model),
                            minval=-bound, maxval=bound, dtype=jnp.float32)
    bq = jax.random.uniform(kbq, (num_heads, d_model),
                            minval=-bound, maxval=bound, dtype=jnp.float32)
    bk = jax.random.uniform(kbk, (num_heads, d_model),
                            minval=-bound, maxval=bound, dtype=jnp.float32)
    bv = jax.random.uniform(kbv, (num_heads, d_model),
                            minval=-bound, maxval=bound, dtype=jnp.float32)

    out = multi_head_self_attention(H, Wq, Wk, Wv, bq, bk, bv)
    out = jax.block_until_ready(out)

    ref = _reference(H, Wq, Wk, Wv, bq, bk, bv)
    assert out.shape == (bs, N, num_heads * d_model), out.shape
    # bf16 MXU inputs + approx EUP reciprocal -> slightly looser tolerance.
    assert jnp.allclose(out, ref, atol=2e-2, rtol=2e-2), (
        float(jnp.max(jnp.abs(out - ref))))

    print("KERNEL_OK")
</pallas_src>

<mosaic_0001>
module attributes {stable_mosaic.version = 11 : i64} {
  func.func @_mhsa_kernel(%arg0: i32, %arg1: memref<1x8x32xf32, #tpu.memory_space<vmem>>, %arg2: memref<32x384xf32, #tpu.memory_space<vmem>>, %arg3: memref<1x384xf32, #tpu.memory_space<vmem>>, %arg4: memref<1x8x128xf32, #tpu.memory_space<vmem>>) attributes {dimension_semantics = [#tpu.dimension_semantics<parallel>], iteration_bounds = array<i64: 2>, scalar_prefetch = 0 : i64, scratch_operands = 0 : i64, tpu.core_type = #tpu.core_type<tc>, window_params = [{transform_indices = @transform_0, window_bounds = array<i64: 1, 8, 32>}, {pipeline_mode = #tpu.pipeline_mode<synchronous>, transform_indices = @transform_1, window_bounds = array<i64: 32, 384>}, {pipeline_mode = #tpu.pipeline_mode<synchronous>, transform_indices = @transform_2, window_bounds = array<i64: 1, 384>}, {transform_indices = @transform_3, window_bounds = array<i64: 1, 8, 128>}]} {
    %c0 = arith.constant 0 : index
    %c0_0 = arith.constant 0 : index
    %c0_1 = arith.constant 0 : index
    %0 = vector.load %arg1[%c0, %c0_0, %c0_1] : memref<1x8x32xf32, #tpu.memory_space<vmem>>, vector<1x8x32xf32>
    %1 = vector.shape_cast %0 : vector<1x8x32xf32> to vector<8x32xf32>
    %c0_2 = arith.constant 0 : index
    %c0_3 = arith.constant 0 : index
    %2 = vector.load %arg2[%c0_2, %c0_3] : memref<32x384xf32, #tpu.memory_space<vmem>>, vector<32x384xf32>
    %c0_4 = arith.constant 0 : index
    %c0_5 = arith.constant 0 : index
    %3 = vector.load %arg3[%c0_4, %c0_5] : memref<1x384xf32, #tpu.memory_space<vmem>>, vector<1x384xf32>
    %cst = arith.constant dense<0.000000e+00> : vector<8x384xf32>
    %4 = tpu.matmul %1, %2, %cst {dimension_numbers = #tpu.dot_dimension_numbers<[1], [0], [0], [1], [0, 0, 1, 1], [], []>} : vector<8x32xf32>, vector<32x384xf32>, vector<8x384xf32> -> vector<8x384xf32>
    %5 = vector.broadcast %3 : vector<1x384xf32> to vector<8x384xf32>
    %6 = arith.addf %4, %5 : vector<8x384xf32>
    %7 = vector.extract_strided_slice %6 {offsets = [0, 0], sizes = [8, 128], strides = [1, 1]} : vector<8x384xf32> to vector<8x128xf32>
    %cst_6 = arith.constant 0.176776692 : f32
    %8 = vector.broadcast %cst_6 : f32 to vector<8x128xf32>
    %9 = arith.mulf %7, %8 : vector<8x128xf32>
    %10 = vector.extract_strided_slice %6 {offsets = [0, 128], sizes = [8, 128], strides = [1, 1]} : vector<8x384xf32> to vector<8x128xf32>
    %11 = vector.extract_strided_slice %6 {offsets = [0, 256], sizes = [8, 128], strides = [1, 1]} : vector<8x384xf32> to vector<8x128xf32>
    %12 = vector.extract_strided_slice %9 {offsets = [0, 0], sizes = [8, 32], strides = [1, 1]} : vector<8x128xf32> to vector<8x32xf32>
    %13 = arith.truncf %12 : vector<8x32xf32> to vector<8x32xbf16>
    %14 = vector.extract_strided_slice %10 {offsets = [0, 0], sizes = [8, 32], strides = [1, 1]} : vector<8x128xf32> to vector<8x32xf32>
    %15 = arith.truncf %14 : vector<8x32xf32> to vector<8x32xbf16>
    %16 = vector.extract_strided_slice %11 {offsets = [0, 0], sizes = [8, 32], strides = [1, 1]} : vector<8x128xf32> to vector<8x32xf32>
    %17 = arith.truncf %16 : vector<8x32xf32> to vector<8x32xbf16>
    %cst_7 = arith.constant dense<0.000000e+00> : vector<8x8xf32>
    %18 = tpu.matmul %13, %15, %cst_7 {dimension_numbers = #tpu.dot_dimension_numbers<[1], [1], [0], [0], [0, 0, 1, 0], [], []>} : vector<8x32xbf16>, vector<8x32xbf16>, vector<8x8xf32> -> vector<8x8xf32>
    %cst_8 = arith.constant dense<0xFF800000> : vector<8xf32>
    %19 = vector.multi_reduction <maximumf>, %18, %cst_8 [1] : vector<8x8xf32> to vector<8xf32>
    %20 = vector.shape_cast %19 : vector<8xf32> to vector<8x1xf32>
    %21 = vector.broadcast %20 : vector<8x1xf32> to vector<8x8xf32>
    %22 = arith.subf %18, %21 : vector<8x8xf32>
    %23 = math.exp %22 : vector<8x8xf32>
    %cst_9 = arith.constant dense<0.000000e+00> : vector<8xf32>
    %24 = vector.multi_reduction <add>, %23, %cst_9 [1] : vector<8x8xf32> to vector<8xf32>
    %25 = vector.shape_cast %24 : vector<8xf32> to vector<8x1xf32>
    %26 = tpu.reciprocal %25 {approx = true} : vector<8x1xf32> -> vector<8x1xf32>
    %27 = vector.broadcast %26 : vector<8x1xf32> to vector<8x8xf32>
    %28 = arith.mulf %23, %27 : vector<8x8xf32>
    %29 = arith.truncf %28 : vector<8x8xf32> to vector<8x8xbf16>
    %cst_10 = arith.constant dense<0.000000e+00> : vector<8x32xf32>
    %30 = tpu.matmul %29, %17, %cst_10 {dimension_numbers = #tpu.dot_dimension_numbers<[1], [0], [0], [1], [0, 0, 1, 1], [], []>} : vector<8x8xbf16>, vector<8x32xbf16>, vector<8x32xf32> -> vector<8x32xf32>
    %31 = vector.extract_strided_slice %9 {offsets = [0, 32], sizes = [8, 32], strides = [1, 1]} : vector<8x128xf32> to vector<8x32xf32>
    %32 = arith.truncf %31 : vector<8x32xf32> to vector<8x32xbf16>
    %33 = vector.extract_strided_slice %10 {offsets = [0, 32], sizes = [8, 32], strides = [1, 1]} : vector<8x128xf32> to vector<8x32xf32>
    %34 = arith.truncf %33 : vector<8x32xf32> to vector<8x32xbf16>
    %35 = vector.extract_strided_slice %11 {offsets = [0, 32], sizes = [8, 32], strides = [1, 1]} : vector<8x128xf32> to vector<8x32xf32>
    %36 = arith.truncf %35 : vector<8x32xf32> to vector<8x32xbf16>
    %cst_11 = arith.constant dense<0.000000e+00> : vector<8x8xf32>
    %37 = tpu.matmul %32, %34, %cst_11 {dimension_numbers = #tpu.dot_dimension_numbers<[1], [1], [0], [0], [0, 0, 1, 0], [], []>} : vector<8x32xbf16>, vector<8x32xbf16>, vector<8x8xf32> -> vector<8x8xf32>
    %cst_12 = arith.constant dense<0xFF800000> : vector<8xf32>
    %38 = vector.multi_reduction <maximumf>, %37, %cst_12 [1] : vector<8x8xf32> to vector<8xf32>
    %39 = vector.shape_cast %38 : vector<8xf32> to vector<8x1xf32>
    %40 = vector.broadcast %39 : vector<8x1xf32> to vector<8x8xf32>
    %41 = arith.subf %37, %40 : vector<8x8xf32>
    %42 = math.exp %41 : vector<8x8xf32>
    %cst_13 = arith.constant dense<0.000000e+00> : vector<8xf32>
    %43 = vector.multi_reduction <add>, %42, %cst_13 [1] : vector<8x8xf32> to vector<8xf32>
    %44 = vector.shape_cast %43 : vector<8xf32> to vector<8x1xf32>
    %45 = tpu.reciprocal %44 {approx = true} : vector<8x1xf32> -> vector<8x1xf32>
    %46 = vector.broadcast %45 : vector<8x1xf32> to vector<8x8xf32>
    %47 = arith.mulf %42, %46 : vector<8x8xf32>
    %48 = arith.truncf %47 : vector<8x8xf32> to vector<8x8xbf16>
    %cst_14 = arith.constant dense<0.000000e+00> : vector<8x32xf32>
    %49 = tpu.matmul %48, %36, %cst_14 {dimension_numbers = #tpu.dot_dimension_numbers<[1], [0], [0], [1], [0, 0, 1, 1], [], []>} : vector<8x8xbf16>, vector<8x32xbf16>, vector<8x32xf32> -> vector<8x32xf32>
    %50 = vector.extract_strided_slice %9 {offsets = [0, 64], sizes = [8, 32], strides = [1, 1]} : vector<8x128xf32> to vector<8x32xf32>
    %51 = arith.truncf %50 : vector<8x32xf32> to vector<8x32xbf16>
    %52 = vector.extract_strided_slice %10 {offsets = [0, 64], sizes = [8, 32], strides = [1, 1]} : vector<8x128xf32> to vector<8x32xf32>
    %53 = arith.truncf %52 : vector<8x32xf32> to vector<8x32xbf16>
    %54 = vector.extract_strided_slice %11 {offsets = [0, 64], sizes = [8, 32], strides = [1, 1]} : vector<8x128xf32> to vector<8x32xf32>
    %55 = arith.truncf %54 : vector<8x32xf32> to vector<8x32xbf16>
    %cst_15 = arith.constant dense<0.000000e+00> : vector<8x8xf32>
    %56 = tpu.matmul %51, %53, %cst_15 {dimension_numbers = #tpu.dot_dimension_numbers<[1], [1], [0], [0], [0, 0, 1, 0], [], []>} : vector<8x32xbf16>, vector<8x32xbf16>, vector<8x8xf32> -> vector<8x8xf32>
    %cst_16 = arith.constant dense<0xFF800000> : vector<8xf32>
    %57 = vector.multi_reduction <maximumf>, %56, %cst_16 [1] : vector<8x8xf32> to vector<8xf32>
    %58 = vector.shape_cast %57 : vector<8xf32> to vector<8x1xf32>
    %59 = vector.broadcast %58 : vector<8x1xf32> to vector<8x8xf32>
    %60 = arith.subf %56, %59 : vector<8x8xf32>
    %61 = math.exp %60 : vector<8x8xf32>
    %cst_17 = arith.constant dense<0.000000e+00> : vector<8xf32>
    %62 = vector.multi_reduction <add>, %61, %cst_17 [1] : vector<8x8xf32> to vector<8xf32>
    %63 = vector.shape_cast %62 : vector<8xf32> to vector<8x1xf32>
    %64 = tpu.reciprocal %63 {approx = true} : vector<8x1xf32> -> vector<8x1xf32>
    %65 = vector.broadcast %64 : vector<8x1xf32> to vector<8x8xf32>
    %66 = arith.mulf %61, %65 : vector<8x8xf32>
    %67 = arith.truncf %66 : vector<8x8xf32> to vector<8x8xbf16>
    %cst_18 = arith.constant dense<0.000000e+00> : vector<8x32xf32>
    %68 = tpu.matmul %67, %55, %cst_18 {dimension_numbers = #tpu.dot_dimension_numbers<[1], [0], [0], [1], [0, 0, 1, 1], [], []>} : vector<8x8xbf16>, vector<8x32xbf16>, vector<8x32xf32> -> vector<8x32xf32>
    %69 = vector.extract_strided_slice %9 {offsets = [0, 96], sizes = [8, 32], strides = [1, 1]} : vector<8x128xf32> to vector<8x32xf32>
    %70 = arith.truncf %69 : vector<8x32xf32> to vector<8x32xbf16>
    %71 = vector.extract_strided_slice %10 {offsets = [0, 96], sizes = [8, 32], strides = [1, 1]} : vector<8x128xf32> to vector<8x32xf32>
    %72 = arith.truncf %71 : vector<8x32xf32> to vector<8x32xbf16>
    %73 = vector.extract_strided_slice %11 {offsets = [0, 96], sizes = [8, 32], strides = [1, 1]} : vector<8x128xf32> to vector<8x32xf32>
    %74 = arith.truncf %73 : vector<8x32xf32> to vector<8x32xbf16>
    %cst_19 = arith.constant dense<0.000000e+00> : vector<8x8xf32>
    %75 = tpu.matmul %70, %72, %cst_19 {dimension_numbers = #tpu.dot_dimension_numbers<[1], [1], [0], [0], [0, 0, 1, 0], [], []>} : vector<8x32xbf16>, vector<8x32xbf16>, vector<8x8xf32> -> vector<8x8xf32>
    %cst_20 = arith.constant dense<0xFF800000> : vector<8xf32>
    %76 = vector.multi_reduction <maximumf>, %75, %cst_20 [1] : vector<8x8xf32> to vector<8xf32>
    %77 = vector.shape_cast %76 : vector<8xf32> to vector<8x1xf32>
    %78 = vector.broadcast %77 : vector<8x1xf32> to vector<8x8xf32>
    %79 = arith.subf %75, %78 : vector<8x8xf32>
    %80 = math.exp %79 : vector<8x8xf32>
    %cst_21 = arith.constant dense<0.000000e+00> : vector<8xf32>
    %81 = vector.multi_reduction <add>, %80, %cst_21 [1] : vector<8x8xf32> to vector<8xf32>
    %82 = vector.shape_cast %81 : vector<8xf32> to vector<8x1xf32>
    %83 = tpu.reciprocal %82 {approx = true} : vector<8x1xf32> -> vector<8x1xf32>
    %84 = vector.broadcast %83 : vector<8x1xf32> to vector<8x8xf32>
    %85 = arith.mulf %80, %84 : vector<8x8xf32>
    %86 = arith.truncf %85 : vector<8x8xf32> to vector<8x8xbf16>
    %cst_22 = arith.constant dense<0.000000e+00> : vector<8x32xf32>
    %87 = tpu.matmul %86, %74, %cst_22 {dimension_numbers = #tpu.dot_dimension_numbers<[1], [0], [0], [1], [0, 0, 1, 1], [], []>} : vector<8x8xbf16>, vector<8x32xbf16>, vector<8x32xf32> -> vector<8x32xf32>
    %88 = tpu.concatenate %30, %49, %68, %87 in 1 : vector<8x32xf32>, vector<8x32xf32>, vector<8x32xf32>, vector<8x32xf32> -> vector<8x128xf32>
    %c0_23 = arith.constant 0 : index
    %c0_24 = arith.constant 0 : index
    %c0_25 = arith.constant 0 : index
    %89 = vector.load %arg4[%c0_23, %c0_24, %c0_25] : memref<1x8x128xf32, #tpu.memory_space<vmem>>, vector<1x8x128xf32>
    %90 = vector.shape_cast %89 : vector<1x8x128xf32> to vector<8x128xf32>
    %91 = vector.shape_cast %88 : vector<8x128xf32> to vector<1x8x128xf32>
    tpu.vector_store %arg4[%c0_23, %c0_24, %c0_25], %91 {strides = array<i32>} : memref<1x8x128xf32, #tpu.memory_space<vmem>>, vector<1x8x128xf32>,
    return
  }
  func.func @transform_0(%arg0: i32) -> (i32, i32, i32) {
    %c0_i32 = arith.constant 0 : i32
    %c0_i32_0 = arith.constant 0 : i32
    %c0_i32_1 = arith.constant 0 : i32
    return %arg0, %c0_i32, %c0_i32_0 : i32, i32, i32
  }
  func.func @transform_1(%arg0: i32) -> (i32, i32) {
    %c0_i32 = arith.constant 0 : i32
    %c0_i32_0 = arith.constant 0 : i32
    %c0_i32_1 = arith.constant 0 : i32
    return %c0_i32, %c0_i32_0 : i32, i32
  }
  func.func @transform_2(%arg0: i32) -> (i32, i32) {
    %c0_i32 = arith.constant 0 : i32
    %c0_i32_0 = arith.constant 0 : i32
    %c0_i32_1 = arith.constant 0 : i32
    return %c0_i32, %c0_i32_0 : i32, i32
  }
  func.func @transform_3(%arg0: i32) -> (i32, i32, i32) {
    %c0_i32 = arith.constant 0 : i32
    %c0_i32_0 = arith.constant 0 : i32
    %c0_i32_1 = arith.constant 0 : i32
    return %arg0, %c0_i32, %c0_i32_0 : i32, i32, i32
  }
}

</mosaic_0001>

<bundles_post_ra>
// kernel: tpu_custom_call.1
= control target key start
LH: loop header
LB: loop body
LE: loop exit
PB: predicated region body
PF: predicated region fallthrough
CT: control target
= control target key end

     0   :  { %8 = vsyncpa [#allocation3], 0  ;;  %s1153_s0 = inlined_call_operand.hbm [shape: f32[2,8,32], index: 0, kind: input, shape index: {}]   ;;  %s1154_s1 = inlined_call_operand.hbm [shape: f32[32,384], index: 1, kind: input, shape index: {}]   ;;  %s1155_s2 = inlined_call_operand.hbm [shape: f32[1,384], index: 2, kind: input, shape index: {}]   ;;  %s1156_s3 = inlined_call_operand.hbm [shape: f32[2,8,128], index: 3, kind: output, shape index: {}]  }
   0x1   :  { %10 = vsyncpa [#allocation3 + $0x1], 0 }
   0x2   :  { %11 = vsyncpa [#allocation6], 0 }
   0x3   :  { %12 = vsyncpa [#allocation4], 0 }
   0x4   :  { %14 = vsyncpa [#allocation4 + $0x1], 0  ;;  %s959_s12 = smov 0   ;;  %s961_s13 = smov 0  }
   0x5   :  { %s963_s14 = smov 0   ;;  %s965_s15 = smov 0  }
   0x6 LB: > { %s130_s18 = sshll.u32 %s1154_s1, 4  ;;  %s983_s19 = sadd.s32 4294967295, %s930_s15   ;;  %s930_s15 = sphi %s965_s15, %s1167_s15   ;;  %s926_s14 = sphi %s963_s14, %s1166_s14   ;;  %s922_s13 = sphi %s961_s13, %s1165_s13   ;;  %s918_s12 = sphi %s959_s12, %s1164_s12   ;;  %s131_s18 = int_to_ptr.hbm [resolvable:$true] %s130_s18 }
   0x7   : > { %p656_p0 = scmp.ge.s32.totalorder %s930_s15, 1  ;;  %p41_p1 = scmp.eq.s32.totalorder %s983_s19, 0 }
   0x8   : > { %p119_p2 = scmp.lt.s32.totalorder %s930_s15, 3  ;;  %s932_s21 = smov [#allocation5]  }
   0x9   : > { %s132_s22 = sshll.u32 %s932_s21, 4  ;;  %s145_s25 = sshll.u32 %s1155_s2, 4  ;;  %s133_s22 = int_to_ptr.vmem [resolvable:$true] %s132_s22  ;;  %s146_s25 = int_to_ptr.hbm [resolvable:$true] %s145_s25 }
   0xa   : > { %p988_p3 = pnand %p656_p0, %p119_p2  ;;  %s933_s26 = smov [#allocation7]  }
   0xb   : > { %s147_s27 = sshll.u32 %s933_s26, 4  ;;  %s934_s28 = smov 384   ;;  %s148_s27 = int_to_ptr.vmem [resolvable:$true] %s147_s27 }
   0xc   : > { %p694_p4 = pneg %p988_p3  ;;  %s935_s29 = smov 24  }
   0xd   : > { %s655_s30 = sadd.s32 4294967294, %s930_s15   ;;  %s1002_s4 = sadd.s32 1, %s930_s15  }
   0xe   : > { %p695_p6 = pnand %p694_p4, %p41_p1  ;;  %s24_s5 = ssub.s32 %s930_s15, %s1002_s4 }
   0xf   : > { %s27_s6 = sadd.s32 1, %s926_s14  ;;  %p25_p7 = scmp.eq.s32.totalorder %s24_s5, 0 }
  0x10   : > { %697 = dma.hbm_to_vmem [thread:$0]  (!%p695_p6), %s131_s18, 1536, %s133_s22, [#allocation6], %s934_s28, %s934_s28, %s935_s29  }
  0x11   : > { %700 = dma.hbm_to_vmem [thread:$0]  (!%p695_p6), %s146_s25, 48, %s148_s27, [#allocation6]  }
  0x12   : > { %p34_p8 = scmp.ne.s32.totalorder %s926_s14, %s922_s13  ;;  %p35_p9 = scmp.eq.s32.totalorder %s930_s15, 0 }
  0x13   : > { %p40_p10 = scmp.ne.s32.totalorder %s922_s13, %s918_s12  ;;  %p106_p13 = scmp.eq.s32.totalorder %s983_s19, 1 }
  0x14   : > { %s1013_s7 = scalar_select %p25_p7, %s926_s14, %s27_s6  }
  0x15   : > { %p1015_p11 = por %p35_p9, %p34_p8  ;;  %p1021_p12 = por %p41_p1, %p40_p10 }
  0x16   : > { %p112_p0 = scmp.eq.s32.totalorder %s655_s30, 1  ;;  %p711_p2 = scmp.lt.s32.totalorder %s930_s15, 2 }
  0x17   : > { %s158_s10 = sand.u32 1, %s926_s14   ;;  %p1028_p4 = por %p106_p13, %p34_p8 }
  0x18   : > { %p1032_p6 = por %p112_p0, %p40_p10  ;;  %s660_s17 = sshll.u32 %s158_s10, 3 }
  0x19   : > { %s661_s18 = sshll.u32 %s930_s15, 3  ;;  %s162_s24 = scalar_lea.vmem [#allocation2], %s660_s17 }
  0x1a   : > { %s166_s23 = scalar_lea.hbm %s1153_s0, %s661_s18  ;;  %s170_s25 = sshll.u32 %s162_s24, 4  ;;  %s171_s25 = int_to_ptr.vmem [resolvable:$true] %s170_s25 }
  0x1b   : > { %s168_s26 = sshll.u32 %s166_s23, 4  ;;  %p1042_p7 = pnand %p711_p2, %p1015_p11  ;;  %s169_s26 = int_to_ptr.hbm [resolvable:$true] %s168_s26 }
  0x1c   : > { %s159_s28 = scalar_lea.sflag [#allocation3], %s158_s10  ;;  %s830_s29 = sshra.s32 %s169_s26, 4  ;;  %s831_s29 = int_to_ptr.hbm [resolvable:$true] %s830_s29 }
  0x1d   : > { %s832_s30 = scalar_lea.hbm %s831_s29, 8  ;;  %p834_p9 = pneg %p1042_p7 }
  0x1e   : > { %p833_p8 = scmp.ne.s32.totalorder %s831_s29, %s832_s30  ;;  %s837_s17 = scalar_lea.hbm %s1153_s0, 16 }
  0x1f   : > { %p838_p11 = scmp.lt.s32.totalorder %s831_s29, %s1153_s0  ;;  %p839_p0 = scmp.lt.s32.totalorder %s837_s17, %s832_s30 }
  0x20   : > { %p835_p10 = pnand %p834_p9, %p833_p8 }
  0x21   : > { %p840_p2 = por %p839_p0, %p838_p11 }
  0x22   : > { %p836_p13 = pneg %p835_p10 }
  0x24   : > { %p841_p5 = pnand %p840_p2, %p836_p13 }
  0x26   : > { %844 = shalt.err (!%p841_p5)
}
  0x27   : > { %704 = dma.hbm_to_vmem [thread:$0]  (!%p1042_p7), %s169_s26, 128, %s171_s25, %s159_s28  }
  0x28   : > { %179 = sbr.rel (%p988_p3) target bundleno = 978 (0x3d2), region = 32  ;;  %s1059_s10 = sand.u32 (!%p988_p3), 1, %s922_s13  }
  0x29   : > { %s663_s21 = sshll.u32 (!%p988_p3), %s1059_s10, 3  ;;  %s182_s22 = scalar_lea.sflag (!%p988_p3), [#allocation3], %s1059_s10 }
  0x2a   : > { %s185_s23 = scalar_lea.vmem (!%p988_p3), [#allocation2], %s663_s21 }
  0x2d   : > { %905 = dma.done.wait (%p1021_p12), %s182_s22, 128  }
  0x2e   : > { %907 = vsyncadd (%p1021_p12), %s182_s22, 4294967168 }
  0x2f   : > { %909 = dma.done.wait (%p41_p1), [#allocation6], 1584  }
  0x30   : > { %911 = vsyncadd (%p41_p1), [#allocation6], 4294965712  ;;  %v230_v0 = vld [vmem:[#allocation5 + $0x48] sm:$0xff]  ;;  %v231_v1 = vld [vmem:[#allocation5 + $0x50] sm:$0xff]  ;;  %vm241_vm0 = vcmask 261120   ;;  %s936_s20 = smov 64  }
  0x31   : > { %v227_v2 = vld [vmem:[#allocation5 + $0x30] sm:$0xff]  ;;  %257 = vmatpush.msra.mxu0 %v230_v0  ;;  %277 = vmatpush.msra.mxu1 %v231_v1  ;;  %v228_v3 = vld [vmem:[#allocation5 + $0x38] sm:$0xff]  ;;  %v225_v5 = vld [vmem:[#allocation5 + $0x20] sm:$0xff]  ;;  %s937_s9 = smov 96   ;;  %s938_s24 = smov 32   ;;  %vm328_vm1 = vcmask 64512  }
  0x32   : > { %v224_v4 = vld [vmem:[#allocation5 + $0x18] sm:$0xff]  ;;  %v221_v6 = vld [vmem:[#allocation5] sm:$0xff]  ;;  %v222_v7 = vld [vmem:[#allocation5 + $0x8] sm:$0xff]  ;;  %vm344_vm2 = vcmask 1043456   ;;  %s679_s25 = sshll.u32 %s983_s19, 3  ;;  %vm545_vm3 = vcmask 523264  }
  0x33   : > { %258 = vmatpush.msra.mxu0 %v227_v2  ;;  %278 = vmatpush.msra.mxu1 %v228_v3  ;;  %v220_v8 = vld [vmem:[%s185_s23] sm:$0xff]  ;;  %v1075_v9 = vld [vmem:[#allocation7] sm:$0x7]  ;;  %v226_v34 = vld [vmem:[#allocation5 + $0x28] sm:$0xff]  ;;  %s561_s28 = scalar_lea.hbm %s1156_s3, %s679_s25  ;;  %s218_s29 = scalar_lea.vmem [#allocation8], %s663_s21  ;;  %vm547_vm4 = vcmask 785408  }
  0x34   : > { %v235_v10 = vperm.slane %v1075_v9, 0  ;;  %v236_v11 = vperm.slane %v1075_v9, 1  ;;  %v232_v32 = vld [vmem:[#allocation5 + $0x58] sm:$0xff]  ;;  %v229_v33 = vld [vmem:[#allocation5 + $0x40] sm:$0xff]  ;;  %v223_v35 = vld [vmem:[#allocation5 + $0x10] sm:$0xff]  ;;  %v237_v50 = vperm.slane %v1075_v9, 2 }
  0x35   : > { %259 = vmatpush.msra.mxu0 %v224_v4  ;;  %279 = vmatpush.msra.mxu1 %v225_v5  ;;  %s563_s30 = sshll.u32 %s218_s29, 4  ;;  %s565_s5 = sshll.u32 %s561_s28, 4  ;;  %s564_s30 = int_to_ptr.vmem [resolvable:$true] %s563_s30  ;;  %s566_s5 = int_to_ptr.hbm [resolvable:$true] %s565_s5 }
  0x36   : > { %297 = vmatpush.msra.mxu2 %v232_v32  ;;  %s551_s19 = scalar_lea.sflag [#allocation4], %s1059_s10  ;;  %s874_s6 = sshra.s32 %s566_s5, 4  ;;  %s875_s6 = int_to_ptr.hbm [resolvable:$true] %s874_s6 }
  0x37   : > { %260 = vmatpush.msra.mxu0 %v221_v6  ;;  %280 = vmatpush.msra.mxu1 %v222_v7  ;;  %s876_s17 = scalar_lea.hbm %s875_s6, 8  ;;  %s880_s21 = scalar_lea.hbm %s1156_s3, 16 }
  0x38   : > { %667 = vmatmul.msk.f32.vlgmr.msra.gmra.mxu0 %vm241_vm0, %v220_v8  ;;  %668 = vmatmul.msk.f32.vlgmr.msra.gmra.mxu1 %vm241_vm0, %v220_v8  ;;  %p877_p1 = scmp.ne.s32.totalorder %s875_s6, %s876_s17  ;;  %p881_p12 = scmp.lt.s32.totalorder %s875_s6, %s1156_s3 }
  0x39   : > { %298 = vmatpush.msra.mxu2 %v229_v33  ;;  %p882_p7 = scmp.lt.s32.totalorder %s880_s21, %s876_s17 }
  0x3a   : > { %p878_p3 = pnand %p877_p1, %p1028_p4 }
  0x3b   : > { %299 = vmatpush.msra.mxu2 %v226_v34  ;;  %p883_p8 = por %p882_p7, %p881_p12 }
  0x3c   : > { %p879_p5 = pneg %p878_p3 }
  0x3d   : > { %300 = vmatpush.msra.mxu2 %v223_v35 }
  0x3e   : > { %669 = vmatmul.msk.f32.vlgmr.msra.gmra.mxu2 %vm241_vm0, %v220_v8  ;;  %p884_p9 = pnand %p883_p8, %p879_p5 }
  0xb5   : > { %v262_v12 = vpop.f32.mrf.mxu0  ;;  %v282_v13 = vpop.f32.mrf.mxu1 }
  0xb6   : > { %v263_v14 = vadd.f32 %v262_v12, %v235_v10  ;;  %v283_v15 = vadd.f32 %v282_v13, %v236_v11 }
  0xb8   : > { %v305_v16 = vmul.f32 0.17677669, %v263_v14  ;;  %v307_v17 = vpack.c.bf16 %v283_v15, %v283_v15 }
  0xba   : > { %v306_v18 = vpack.c.bf16 %v305_v16, %v305_v16  ;;  %422 = vrot.lane.b32.xlu1 %v307_v17, %s936_s20  ;;  %365 = vrot.lane.b32.xlu0 %v307_v17, %s937_s9  ;;  %v313_v19 = vsel %vm241_vm0, %v307_v17, 0 }
  0xbb   : > { %322 = vmatpush.bf16.xpose.msra.mxu3 %v313_v19 }
  0xbc   : > { %420 = vrot.lane.b32.xlu2 %v306_v18, %s936_s20 }
  0xc1   : > { %v302_v51 = vpop.f32.mrf.mxu2 }
  0xc2   : > { %478 = vrot.lane.b32.xlu1 %v307_v17, %s938_s24  ;;  %362 = vrot.lane.b32.xlu0 %v306_v18, %s937_s9  ;;  %v303_v52 = vadd.f32 %v302_v51, %v237_v50 }
  0xc3   : > { %670 = vmatmul.msk.bf16.vlgmr.msra.gmra.mxu3 %vm241_vm0, %v306_v18 }
  0xc4   : > { %476 = vrot.lane.b32.xlu2 %v306_v18, %s938_s24  ;;  %v308_v53 = vpack.c.bf16 %v303_v52, %v303_v52 }
  0xc6   : > { %v346_v54 = vsel %vm344_vm2, %v308_v53, 0 }
  0xc7   : > { %355 = vmatpush.bf16.msrb.mxu0 %v346_v54 }
 0x116   : > { %v421_v24 = vpop.permute.xlu2 %420 }
 0x11e   : > { %v477_v28 = vpop.permute.xlu2 %476 }
 0x12c   : > { %v423_v20 = vpop.permute.xlu1 %422  ;;  %v366_v21 = vpop.permute.xlu0 %365 }
 0x12d   : > { %v371_v22 = vsel %vm241_vm0, %v366_v21, 0  ;;  %v428_v23 = vsel %vm241_vm0, %v423_v20, 0 }
 0x12e   : > { %380 = vmatpush.bf16.xpose.msrb.mxu1 %v371_v22  ;;  %437 = vmatpush.bf16.xpose.msrb.mxu3 %v428_v23 }
 0x134   : > { %v479_v25 = vpop.permute.xlu1 %478  ;;  %v363_v26 = vpop.permute.xlu0 %362 }
 0x135   : > { %v484_v27 = vsel %vm241_vm0, %v479_v25, 0  ;;  %672 = vmatmul.msk.bf16.vlgmr.msrb.gmra.mxu1 %vm241_vm0, %v363_v26  ;;  %674 = vmatmul.msk.bf16.vlgmr.msrb.gmra.mxu3 %vm241_vm0, %v421_v24 }
 0x136   : > { %493 = vmatpush.bf16.xpose.msra.mxu1 %v484_v27 }
 0x145   : > { %676 = vmatmul.msk.bf16.vlgmr.msra.gmra.mxu1 %vm241_vm0, %v477_v28 }
 0x146   : > { %v324_v29 = vpop.f32.mrf.mxu3 }
 0x147   : > { %v329_v30 = vsel %vm328_vm1, %v324_v29, -inf }
 0x148   : > { %330 = vmax.xlane.f32.xlu1 %v329_v30 }
 0x14e   : > { %v326_v31 = vpop.f32.mrf.mxu3 }
 0x1b2   : > { %v382_v36 = vpop.f32.mrf.mxu1 }
 0x1b3   : > { %v386_v37 = vsel %vm328_vm1, %v382_v36, -inf }
 0x1b4   : > { %387 = vmax.xlane.f32.xlu0 %v386_v37 }
 0x1b8   : > { %v439_v38 = vpop.f32.mrf.mxu3 }
 0x1b9   : > { %v443_v49 = vsel %vm328_vm1, %v439_v38, -inf }
 0x1ba   : > { %v384_v39 = vpop.f32.mrf.mxu1 }
 0x1bb   : > { %v331_v40 = vpop.xlane.xlu1 %330 }
 0x1bc   : > { %v332_v41 = vsub.f32 %v324_v29, %v331_v40 }
 0x1be   : > { %v333_v42 = vmul.f32 1.442695, %v332_v41 }
 0x1c0   : > { %754 = vpow2.f32 %v333_v42  ;;  %v441_v43 = vpop.f32.mrf.mxu3 }
 0x1c2   : > { %v495_v44 = vpop.f32.mrf.mxu1 }
 0x1c3   : > { %v499_v45 = vsel %vm328_vm1, %v495_v44, -inf }
 0x1c4   : > { %500 = vmax.xlane.f32.xlu2 %v499_v45 }
 0x1c6   : > { %v755_v46 = vpop.eup %754 }
 0x1c7   : > { %v335_v47 = vsel %vm328_vm1, %v755_v46, 0.0 }
 0x1c8   : > { %336 = vadd.xlane.f32.xlu1 %v335_v47 }
 0x1ca   : > { %v497_v48 = vpop.f32.mrf.mxu1 }
 0x1cc   : > { %444 = vmax.xlane.f32.xlu2 %v443_v49 }
 0x1e4   : > { %399 = vrot.lane.b32.xlu2 %v308_v53, %s937_s9 }
 0x227   : > { %v388_v55 = vpop.xlane.xlu0 %387 }
 0x228   : > { %v389_v56 = vsub.f32 %v382_v36, %v388_v55 }
 0x22a   : > { %v390_v57 = vmul.f32 1.442695, %v389_v56 }
 0x22c   : > { %756 = vpow2.f32 %v390_v57 }
 0x232   : > { %v757_v58 = vpop.eup %756 }
 0x233   : > { %v392_v59 = vsel %vm328_vm1, %v757_v58, 0.0 }
 0x234   : > { %393 = vadd.xlane.f32.xlu0 %v392_v59 }
 0x237   : > { %v501_v60 = vpop.xlane.xlu2 %500 }
 0x238   : > { %v502_v61 = vsub.f32 %v495_v44, %v501_v60 }
 0x23a   : > { %v503_v62 = vmul.f32 1.442695, %v502_v61 }
 0x23b   : > { %v337_v63 = vpop.xlane.xlu1 %336 }
 0x23c   : > { %758 = vpow2.f32 %v503_v62 }
 0x23d   : > { %760 = vrcp.f32 %v337_v63 }
 0x23f   : > { %v445_v0 = vpop.xlane.xlu2 %444 }
 0x240   : > { %v446_v1 = vsub.f32 %v439_v38, %v445_v0 }
 0x242   : > { %v759_v2 = vpop.eup %758  ;;  %v447_v3 = vmul.f32 1.442695, %v446_v1 }
 0x243   : > { %v761_v4 = vpop.eup %760  ;;  %v505_v5 = vsel %vm328_vm1, %v759_v2, 0.0 }
 0x244   : > { %v339_v6 = vmul.f32 %v761_v4, %v755_v46  ;;  %762 = vpow2.f32 %v447_v3  ;;  %506 = vadd.xlane.f32.xlu0 %v505_v5 }
 0x246   : > { %v340_v7 = vpack.c.bf16 %v339_v6, %v339_v6 }
 0x247   : > { %v400_v10 = vpop.permute.xlu2 %399 }
 0x248   : > { %671 = vmatmul.msk.bf16.vlgmr.msrb.gmra.mxu0 %vm328_vm1, %v340_v7  ;;  %v405_v11 = vsel %vm344_vm2, %v400_v10, 0 }
 0x249   : > { %414 = vmatpush.bf16.msrb.mxu2 %v405_v11 }
 0x24a   : > { %v763_v8 = vpop.eup %762 }
 0x24b   : > { %v449_v9 = vsel %vm328_vm1, %v763_v8, 0.0 }
 0x24c   : > { %450 = vadd.xlane.f32.xlu1 %v449_v9 }
 0x258   : > { %511 = vrot.lane.b32.xlu0 %v308_v53, %s938_s24 }
 0x265   : > { %455 = vrot.lane.b32.xlu1 %v308_v53, %s936_s20 }
 0x2a7   : > { %v394_v12 = vpop.xlane.xlu0 %393 }
 0x2a8   : > { %764 = vrcp.f32 %v394_v12 }
 0x2ae   : > { %v765_v13 = vpop.eup %764 }
 0x2af   : > { %v396_v14 = vmul.f32 %v765_v13, %v757_v58 }
 0x2b1   : > { %v397_v15 = vpack.c.bf16 %v396_v14, %v396_v14 }
 0x2b3   : > { %673 = vmatmul.msk.bf16.vlgmr.msrb.gmra.mxu2 %vm328_vm1, %v397_v15 }
 0x2b7   : > { %v507_v16 = vpop.xlane.xlu0 %506 }
 0x2b8   : > { %766 = vrcp.f32 %v507_v16 }
 0x2be   : > { %v767_v18 = vpop.eup %766 }
 0x2bf   : > { %v509_v19 = vmul.f32 %v767_v18, %v759_v2  ;;  %v451_v20 = vpop.xlane.xlu1 %450 }
 0x2c0   : > { %768 = vrcp.f32 %v451_v20 }
 0x2c1   : > { %v510_v23 = vpack.c.bf16 %v509_v19, %v509_v19 }
 0x2c5   : > { %v357_v17 = vpop.f32.mrf.mxu0 }
 0x2c6   : > { %v769_v25 = vpop.eup %768 }
 0x2c7   : > { %v453_v26 = vmul.f32 %v769_v25, %v763_v8 }
 0x2c9   : > { %v454_v29 = vpack.c.bf16 %v453_v26, %v453_v26 }
 0x2ca   : > { %v512_v21 = vpop.permute.xlu0 %511 }
 0x2cb   : > { %v517_v22 = vsel %vm344_vm2, %v512_v21, 0 }
 0x2cc   : > { %526 = vmatpush.bf16.msra.mxu2 %v517_v22 }
 0x2cd   : > { %v359_v24 = vpop.f32.mrf.mxu0 }
 0x2cf   : > { %677 = vmatmul.msk.bf16.vlgmr.msra.gmra.mxu2 %vm328_vm1, %v510_v23 }
 0x2d7   : > { %v456_v27 = vpop.permute.xlu1 %455 }
 0x2d8   : > { %v461_v28 = vsel %vm344_vm2, %v456_v27, 0 }
 0x2d9   : > { %470 = vmatpush.bf16.msra.mxu0 %v461_v28 }
 0x2dc   : > { %675 = vmatmul.msk.bf16.vlgmr.msra.gmra.mxu0 %vm328_vm1, %v454_v29 }
 0x336   : > { %v416_v30 = vpop.f32.mrf.mxu2 }
 0x337   : > { %533 = vrot.lane.b32.xlu2 %v416_v30, %s938_s24 }
 0x33e   : > { %v418_v31 = vpop.f32.mrf.mxu2 }
 0x352   : > { %v528_v32 = vpop.f32.mrf.mxu2 }
 0x353   : > { %541 = vrot.lane.b32.xlu2 %v528_v32, %s937_s9 }
 0x359   : > { %v472_v33 = vpop.f32.mrf.mxu0 }
 0x35a   : > { %537 = vrot.lane.b32.xlu0 %v472_v33, %s936_s20  ;;  %v530_v34 = vpop.f32.mrf.mxu2 }
 0x361   : > { %v474_v35 = vpop.f32.mrf.mxu0 }
 0x391   : > { %v534_v36 = vpop.permute.xlu2 %533 }
 0x392   : > { %v544_v37 = vsel %vm241_vm0, %v357_v17, %v534_v36 }
 0x3ad   : > { %v542_v39 = vpop.permute.xlu2 %541 }
 0x3cc   : > { %v538_v38 = vpop.permute.xlu0 %537 }
 0x3cd   : > { %v546_v40 = vsel %vm545_vm3, %v544_v37, %v538_v38 }
 0x3ce   : > { %v548_v41 = vsel %vm547_vm4, %v546_v40, %v542_v39 }
 0x3cf   : > { %549 = vst [vmem:[%s218_s29] sm:$0xff] %v548_v41 }
 0x3d0   : > { %887 = shalt.err (!%p884_p9)
}
 0x3d1   : > { %692 = dma.vmem_to_hbm [thread:$0]  (%p1028_p4), %s564_s30, 128, %s566_s5, %s551_s19  }
 0x3d2 PF: > { %s577_s10 = sand.u32 1, %s918_s12   ;;  %p1163_p10 = scmp.ge.s32.totalorder %s930_s15, 2 }
 0x3d3   : > { %s578_s20 = scalar_lea.sflag [#allocation4], %s577_s10 }
 0x3d4   : > { %p706_p13 = pnand %p1163_p10, %p1032_p6 }
 0x3d6   : > { %p707_p11 = pneg %p706_p13 }
 0x3d8   : > { %913 = dma.done.wait (%p707_p11), %s578_s20, 128  }
 0x3d9   : > { %915 = vsyncadd (%p707_p11), %s578_s20, 4294967168  ;;  %p17_p0 = scmp.ge.s32.totalorder %s1002_s4, 4   ;;  %s1164_s12 = smov %s922_s13 }
 0x3da   : > { %s1165_s13 = smov %s926_s14  ;;  %s1166_s14 = smov %s1013_s7 }
 0x3db   : > { %s1167_s15 = smov %s1002_s4  ;;  %19 = sbr.rel (!%p17_p0) target bundleno = 6 (0x6), region = 85 }
 0x3e0   :  { %584 = vsyncpa [#allocation3], 1 }
 0x3e1   :  { %586 = vsyncpa [#allocation3 + $0x1], 1 }
 0x3e2   :  { %587 = vsyncpa [#allocation6], 1 }
 0x3e3   :  { %588 = vsyncpa [#allocation4], 1 }
 0x3e4   :  { %590 = vsyncpa [#allocation4 + $0x1], 1 }

</bundles_post_ra>
